<compile_context>
chip_gen: v6e
topology: v6e:2x2x1
jax: 0.10.0
libtpu: 0.0.40
codegen_flags: <defaults>
</compile_context>

<pallas_src>
import functools

import jax
import jax.numpy as jnp
from jax.experimental import pallas as pl
from jax.experimental.pallas import tpu as pltpu


def _round_up(x: int, m: int) -> int:
    return ((x + m - 1) // m) * m


def _cdiv(a: int, b: int) -> int:
    return (a + b - 1) // b


def _vmem_budgets():
    """(tile_budget_bytes, vmem_limit_bytes), TPU-generation aware."""
    cap = None
    try:
        info = pltpu.get_tpu_info()
        cap = int(getattr(info, "vmem_capacity_bytes", 0)) or None
    except Exception:
        cap = None
    if cap is None:
        cap = 64 << 20  # conservative default: v7x per-TC capacity
    if cap >= (100 << 20):      # v5e / v6e: 128 MiB VMEM per TC
        return 48 << 20, 96 << 20
    return 20 << 20, 40 << 20   # v7x: 64 MiB VMEM per TC


def _tile_loss(x, t, *, gamma, one_minus_gamma):
    """Per-element weak-AN loss for one (tb, C) tile (f32 in, f32 out)."""
    # Numerically stable logsigmoid(-x) = min(-x, 0) - log1p(exp(-|x|)).
    ls_neg = jnp.minimum(-x, 0.0) - jnp.log1p(jnp.exp(-jnp.abs(x)))
    # t*logsigmoid(x) + gamma*(1-t)*logsigmoid(-x)
    #   = t*x + (gamma + (1-gamma)*t) * logsigmoid(-x)      (folded weights)
    # Targets of -1 are treated arithmetically, exactly like the PyTorch module.
    return t * x + (gamma + one_minus_gamma * t) * ls_neg


def _store_partial(o_ref, loss, *, batch, tb, need_mask, num_tiles):
    """Reduce (tb, C) loss over rows and store an (8, C) replicated partial."""

    def put(l):
        p = -jnp.sum(l, axis=0, keepdims=True)            # (1, C) sublane reduce
        o_ref[...] = jnp.broadcast_to(p, o_ref.shape)     # (8, C) tiling-legal block

    if not need_mask:
        put(loss)
        return

    i = pl.program_id(0)
    is_last = i == (num_tiles - 1)

    @pl.when(jnp.logical_not(is_last))
    def _():
        put(loss)

    @pl.when(is_last)
    def _():
        # Row predicate on a (tb, 1) column; SELECT discards any garbage/NaN
        # data in the overhanging region of the last block.
        rows = i * tb + jax.lax.broadcasted_iota(jnp.int32, (loss.shape[0], 1), 0)
        put(jnp.where(rows < batch, loss, 0.0))


def _dense_kernel(x_ref, t_ref, o_ref, *, gamma, one_minus_gamma,
                  batch, tb, need_mask, num_tiles):
    x = x_ref[...].astype(jnp.float32)
    t = t_ref[...].astype(jnp.float32)          # int8 / bf16 / f32 all fine
    loss = _tile_loss(x, t, gamma=gamma, one_minus_gamma=one_minus_gamma)
    _store_partial(o_ref, loss, batch=batch, tb=tb,
                   need_mask=need_mask, num_tiles=num_tiles)


def _index_kernel(x_ref, idx_ref, o_ref, *, gamma, one_minus_gamma,
                  batch, tb, need_mask, num_tiles):
    x = x_ref[...].astype(jnp.float32)
    idx = idx_ref[...]                          # (tb, 1) int32 class indices
    classes = jax.lax.broadcasted_iota(jnp.int32, x.shape, 1)
    t = (classes == idx).astype(jnp.float32)    # one-hot built in-kernel
    loss = _tile_loss(x, t, gamma=gamma, one_minus_gamma=one_minus_gamma)
    _store_partial(o_ref, loss, batch=batch, tb=tb,
                   need_mask=need_mask, num_tiles=num_tiles)


def weak_assume_negative_loss_with_logits(inputs, targets, num_classes, *,
                                          max_tb: int = 8192):
    """Pallas implementation of WeakAssumeNegativeLossWithLogits.forward.

    inputs:  (B, C) float logits (f32 or bf16; bf16 halves HBM traffic).
    targets: (B, C) dense labels in {1, 0, -1} (any dtype; int8 keeps HBM
             traffic minimal) OR (B,) integer class indices (one-hot is built
             in-kernel, never materialized in HBM).
    Returns scalar float32:  -(loss.sum(-1)).mean(0)
    """
    assert num_classes >= 2, "num_classes must be >= 2 (gamma = 1/(C-1))"
    gamma = 1.0 / (num_classes - 1)
    assert 0.0 <= gamma <= 1.0
    one_minus_gamma = 1.0 - gamma

    B, C = inputs.shape
    index_targets = targets.ndim != inputs.ndim

    tile_budget, vmem_limit = _vmem_budgets()

    c_lanes = _round_up(C, 128)
    in_bytes = jnp.dtype(inputs.dtype).itemsize
    if index_targets:
        row_align = max(8, 32 // in_bytes)
        tgt_row_bytes = 128 * 4        # (tb, 1) int32 lane-pads to 128 lanes in VMEM
    else:
        tgt_bytes = jnp.dtype(targets.dtype).itemsize
        row_align = max(8, 32 // in_bytes, 32 // tgt_bytes)
        tgt_row_bytes = c_lanes * tgt_bytes

    # Double-buffered input streams dominate VMEM use.
    per_row = 2 * (c_lanes * in_bytes + tgt_row_bytes)
    tb = min(max_tb, max(1, tile_budget // max(per_row, 1)))

    # Give multi-TensorCore parts (v7x) at least a few tiles to shard across.
    if B >= 4 * row_align:
        min_tiles = 4
    elif B >= 2 * row_align:
        min_tiles = 2
    else:
        min_tiles = 1
    if min_tiles > 1:
        tb = min(tb, _cdiv(B, min_tiles))

    if tb >= B:
        tb = B                      # block dim == full array dim is always legal
    else:
        tb = max(row_align, (tb // row_align) * row_align)
        tb = min(tb, B)

    num_tiles = _cdiv(B, tb)
    need_mask = (B % tb) != 0       # last block overhangs; mask only that tile

    # Partials: per tile an (8, C) sublane-replicated block (keeps the output
    # BlockSpec on the (8, 128) tiling grid); replica 0 is read back below.
    out_shape = jax.ShapeDtypeStruct((num_tiles * 8, C), jnp.float32)
    out_spec = pl.BlockSpec((8, C), lambda i: (i, 0))

    compiler_params = pltpu.CompilerParams(
        dimension_semantics=("parallel",),   # no cross-step carry -> dual-TC on v7x
        vmem_limit_bytes=vmem_limit,
    )

    common = dict(gamma=float(gamma), one_minus_gamma=float(one_minus_gamma),
                  batch=B, tb=tb, need_mask=need_mask, num_tiles=num_tiles)

    if index_targets:
        idx = targets.astype(jnp.int32).reshape(B, 1)
        kernel = functools.partial(_index_kernel, **common)
        in_specs = [
            pl.BlockSpec((tb, C), lambda i: (i, 0)),
            pl.BlockSpec((tb, 1), lambda i: (i, 0)),
        ]
        operands = (inputs, idx)
    else:
        kernel = functools.partial(_dense_kernel, **common)
        in_specs = [
            pl.BlockSpec((tb, C), lambda i: (i, 0)),
            pl.BlockSpec((tb, C), lambda i: (i, 0)),
        ]
        operands = (inputs, targets)

    partials = pl.pallas_call(
        kernel,
        out_shape=out_shape,
        grid_spec=pltpu.PrefetchScalarGridSpec(
            num_scalar_prefetch=0,
            grid=(num_tiles,),
            in_specs=in_specs,
            out_specs=out_spec,
        ),
        compiler_params=compiler_params,
    )(*operands)

    # Tiny cross-lane / cross-tile reduction + batch mean, done in XLA.
    partials = partials.reshape(num_tiles, 8, C)[:, 0, :]
    return jnp.sum(partials) / jnp.float32(B)


def _reference(inputs, targets, num_classes):
    gamma = 1.0 / (num_classes - 1)
    if targets.ndim != inputs.ndim:
        targets = jax.nn.one_hot(targets, inputs.shape[-1], dtype=jnp.float32)
    x = inputs.astype(jnp.float32)
    t = targets.astype(jnp.float32)
    loss = t * jax.nn.log_sigmoid(x) + (1.0 - t) * gamma * jax.nn.log_sigmoid(-x)
    return -loss.sum(axis=-1).mean(axis=0)


if __name__ == "__main__":
    key = jax.random.PRNGKey(0)
    k1, k2, k3, k4, k5, k6 = jax.random.split(key, 6)

    ok = True

    # 1) Dense {1, 0, -1} targets supplied as int8 (narrow HBM stream),
    #    single full-batch tile (block dim == array dim).
    B, C = 16, 128
    x1 = jax.random.normal(k1, (B, C), dtype=jnp.float32) * 2.0
    pos = jax.random.randint(k2, (B,), 0, C)
    t1 = jnp.zeros((B, C), dtype=jnp.int8)
    t1 = t1.at[jnp.arange(B), pos].set(1)
    t1 = t1.at[jnp.arange(B), (pos + 7) % C].set(-1)
    out1 = jax.block_until_ready(
        weak_assume_negative_loss_with_logits(x1, t1, num_classes=C))
    ref1 = _reference(x1, t1, num_classes=C)
    ok &= bool(jnp.allclose(out1, ref1, rtol=1e-5, atol=1e-4))

    # 2) Float targets, ragged batch and non-128 class count (single tile).
    B2, C2 = 13, 96
    x2 = jax.random.normal(k3, (B2, C2), dtype=jnp.float32)
    pos2 = jax.random.randint(k4, (B2,), 0, C2)
    t2 = jnp.zeros((B2, C2), dtype=jnp.float32)
    t2 = t2.at[jnp.arange(B2), pos2].set(1.0)
    out2 = jax.block_until_ready(
        weak_assume_negative_loss_with_logits(x2, t2, num_classes=C2))
    ref2 = _reference(x2, t2, num_classes=C2)
    ok &= bool(jnp.allclose(out2, ref2, rtol=1e-5, atol=1e-4))

    # 3) Integer class-index targets -> one-hot built in-kernel, multi-tile grid.
    out3 = jax.block_until_ready(
        weak_assume_negative_loss_with_logits(x1, pos, num_classes=C))
    ref3 = _reference(x1, pos, num_classes=C)
    ok &= bool(jnp.allclose(out3, ref3, rtol=1e-5, atol=1e-4))

    # 4) Multi-tile grid with an overhanging (masked) last block: exercises the
    #    no-pad ragged path (B % tb != 0, num_tiles > 1).
    B4, C4 = 42, 160
    x4 = jax.random.normal(k5, (B4, C4), dtype=jnp.float32)
    pos4 = jax.random.randint(k6, (B4,), 0, C4)
    t4 = jnp.zeros((B4, C4), dtype=jnp.float32)
    t4 = t4.at[jnp.arange(B4), pos4].set(1.0)
    out4 = jax.block_until_ready(
        weak_assume_negative_loss_with_logits(x4, t4, num_classes=C4))
    ref4 = _reference(x4, t4, num_classes=C4)
    ok &= bool(jnp.allclose(out4, ref4, rtol=1e-5, atol=1e-4))

    assert ok, (out1, ref1, out2, ref2, out3, ref3, out4, ref4)
    print("KERNEL_OK")
</pallas_src>

<mosaic_0001>
module attributes {stable_mosaic.version = 11 : i64} {
  func.func @_dense_kernel(%arg0: i32, %arg1: memref<16x128xf32, #tpu.memory_space<vmem>>, %arg2: memref<16x128xi8, #tpu.memory_space<vmem>>, %arg3: memref<8x128xf32, #tpu.memory_space<vmem>>) attributes {dimension_semantics = [#tpu.dimension_semantics<parallel>], iteration_bounds = array<i64: 1>, scalar_prefetch = 0 : i64, scratch_operands = 0 : i64, tpu.core_type = #tpu.core_type<tc>, window_params = [{transform_indices = @transform_0, window_bounds = array<i64: 16, 128>}, {transform_indices = @transform_1, window_bounds = array<i64: 16, 128>}, {transform_indices = @transform_2, window_bounds = array<i64: 8, 128>}]} {
    %c0 = arith.constant 0 : index
    %c0_0 = arith.constant 0 : index
    %0 = vector.load %arg1[%c0, %c0_0] : memref<16x128xf32, #tpu.memory_space<vmem>>, vector<16x128xf32>
    %c0_1 = arith.constant 0 : index
    %c0_2 = arith.constant 0 : index
    %1 = vector.load %arg2[%c0_1, %c0_2] : memref<16x128xi8, #tpu.memory_space<vmem>>, vector<16x128xi8>
    %2 = arith.sitofp %1 : vector<16x128xi8> to vector<16x128xf32>
    %cst = arith.constant 0.000000e+00 : f32
    %3 = vector.broadcast %cst : f32 to vector<16x128xf32>
    %4 = arith.subf %3, %0 : vector<16x128xf32>
    %cst_3 = arith.constant 0.000000e+00 : f32
    %5 = vector.broadcast %cst_3 : f32 to vector<16x128xf32>
    %6 = arith.minimumf %4, %5 : vector<16x128xf32>
    %7 = math.absf %0 : vector<16x128xf32>
    %cst_4 = arith.constant 0.000000e+00 : f32
    %8 = vector.broadcast %cst_4 : f32 to vector<16x128xf32>
    %9 = arith.subf %8, %7 : vector<16x128xf32>
    %10 = math.exp %9 : vector<16x128xf32>
    %11 = math.log1p %10 : vector<16x128xf32>
    %12 = arith.subf %6, %11 : vector<16x128xf32>
    %13 = arith.mulf %2, %0 : vector<16x128xf32>
    %cst_5 = arith.constant 0.992125988 : f32
    %14 = vector.broadcast %cst_5 : f32 to vector<16x128xf32>
    %15 = arith.mulf %14, %2 : vector<16x128xf32>
    %cst_6 = arith.constant 0.00787401571 : f32
    %16 = vector.broadcast %cst_6 : f32 to vector<16x128xf32>
    %17 = arith.addf %16, %15 : vector<16x128xf32>
    %18 = arith.mulf %17, %12 : vector<16x128xf32>
    %19 = arith.addf %13, %18 : vector<16x128xf32>
    %cst_7 = arith.constant dense<0.000000e+00> : vector<128xf32>
    %20 = vector.multi_reduction <add>, %19, %cst_7 [0] : vector<16x128xf32> to vector<128xf32>
    %21 = vector.shape_cast %20 : vector<128xf32> to vector<1x128xf32>
    %cst_8 = arith.constant 0.000000e+00 : f32
    %22 = vector.broadcast %cst_8 : f32 to vector<1x128xf32>
    %23 = arith.subf %22, %21 : vector<1x128xf32>
    %24 = vector.shape_cast %23 : vector<1x128xf32> to vector<1x128xf32>
    %25 = vector.broadcast %24 : vector<1x128xf32> to vector<8x128xf32>
    %c0_9 = arith.constant 0 : index
    %c0_10 = arith.constant 0 : index
    %26 = vector.load %arg3[%c0_9, %c0_10] : memref<8x128xf32, #tpu.memory_space<vmem>>, vector<8x128xf32>
    tpu.vector_store %arg3[%c0_9, %c0_10], %25 {strides = array<i32>} : memref<8x128xf32, #tpu.memory_space<vmem>>, vector<8x128xf32>,
    return
  }
  func.func @transform_0(%arg0: i32) -> (i32, i32) {
    %c0_i32 = arith.constant 0 : i32
    %c0_i32_0 = arith.constant 0 : i32
    return %arg0, %c0_i32 : i32, i32
  }
  func.func @transform_1(%arg0: i32) -> (i32, i32) {
    %c0_i32 = arith.constant 0 : i32
    %c0_i32_0 = arith.constant 0 : i32
    return %arg0, %c0_i32 : i32, i32
  }
  func.func @transform_2(%arg0: i32) -> (i32, i32) {
    %c0_i32 = arith.constant 0 : i32
    %c0_i32_0 = arith.constant 0 : i32
    return %arg0, %c0_i32 : i32, i32
  }
}

</mosaic_0001>

<bundles_post_ra>
// kernel: tpu_custom_call.1
= control target key start
LH: loop header
LB: loop body
LE: loop exit
PB: predicated region body
PF: predicated region fallthrough
CT: control target
= control target key end

     0   :  { %7 = vsyncpa [#allocation3], 0  ;;  %s231_s0 = inlined_call_operand.hbm [shape: f32[16,128], index: 0, kind: input, shape index: {}]   ;;  %s232_s1 = inlined_call_operand.hbm [shape: s8[16,128], index: 1, kind: input, shape index: {}]   ;;  %s233_s2 = inlined_call_operand.hbm [shape: f32[8,128], index: 2, kind: output, shape index: {}]  }
   0x1   :  { %8 = vsyncpa [#allocation6], 0 }
   0x2   :  { %9 = vsyncpa [#allocation4], 0  ;;  %s200_s9 = smov [#allocation2]  }
   0x3   :  { %s15_s10 = sshll.u32 %s200_s9, 4  ;;  %s16_s10 = int_to_ptr.vmem [resolvable:$true] %s15_s10 }
   0x4   :  { %s142_s11 = scalar_lea.vmem %s16_s10, 256  ;;  %p147_p1 = scmp.lt.s32.totalorder %s16_s10, %s16_s10 }
   0x5   :  { %p143_p0 = scmp.ne.s32.totalorder %s16_s10, %s142_s11  ;;  %p148_p2 = scmp.lt.s32.totalorder %s142_s11, %s142_s11 }
   0x7   :  { %p149_p3 = por %p148_p2, %p147_p1 }
   0x9   :  { %p150_p4 = pnand %p149_p3, %p143_p0 }
   0xb   :  { %153 = shalt.err (!%p150_p4)
}
   0xc   :  { %s201_s12 = smov 128   ;;  %s202_s13 = smov 8  }
   0xd   :  { %21 = dma.hbm_to_vmem [thread:$0]  %s231_s0, 256, %s16_s10, [#allocation3], %s201_s12, %s201_s12, %s202_s13  }
   0xe   :  { %s203_s16 = smov [#allocation5]  }
   0xf   :  { %s27_s17 = sshll.u32 %s203_s16, 4  ;;  %s28_s17 = int_to_ptr.vmem [resolvable:$true] %s27_s17 }
  0x10   :  { %s162_s18 = scalar_lea.vmem %s28_s17, 64  ;;  %p167_p6 = scmp.lt.s32.totalorder %s28_s17, %s28_s17 }
  0x11   :  { %p163_p5 = scmp.ne.s32.totalorder %s28_s17, %s162_s18  ;;  %p168_p7 = scmp.lt.s32.totalorder %s162_s18, %s162_s18 }
  0x13   :  { %p169_p8 = por %p168_p7, %p167_p6 }
  0x15   :  { %p170_p9 = pnand %p169_p8, %p163_p5 }
  0x17   :  { %173 = shalt.err (!%p170_p9)
}
  0x18   :  { %s204_s19 = smov 32   ;;  %s205_s20 = smov 2  }
  0x19   :  { %33 = dma.hbm_to_vmem [thread:$0]  %s232_s1, 64, %s28_s17, [#allocation6], %s204_s19, %s204_s19, %s205_s20  }
  0x1a   :  { %194 = dma.done.wait [#allocation3], 256  }
  0x1b   :  { %195 = vsyncadd [#allocation3], 4294967040 }
  0x1c   :  { %196 = dma.done.wait [#allocation6], 64  }
  0x1d   :  { %197 = vsyncadd [#allocation6], 4294967232  ;;  %v40_v0 = vld [vmem:[#allocation2] sm:$0xff]  ;;  %v41_v1 = vld [vmem:[#allocation2 + $0x8] sm:$0xff]  ;;  %s206_s0 = smov [#allocation7]  }
  0x1e   :  { %v52_v2 = vand.u32 2147483647, %v40_v0  ;;  %v53_v3 = vand.u32 2147483647, %v41_v1  ;;  %v116_v12 = vld [vmem:[#allocation5] sm:$0xf]  }
  0x1f   :  { %v117_v13 = vunpack.c.0.s8 %v116_v12  ;;  %v118_v14 = vunpack.c.1.s8 %v116_v12  ;;  %v48_v20 = vsub.f32 0.0, %v40_v0  ;;  %v49_v23 = vsub.f32 0.0, %v41_v1  ;;  %s105_s1 = sshll.u32 %s206_s0, 4  ;;  %s106_s1 = int_to_ptr.vmem [resolvable:$true] %s105_s1 }
  0x20   :  { %v54_v4 = vsub.f32 0.0, %v52_v2  ;;  %v55_v5 = vsub.f32 0.0, %v53_v3  ;;  %s174_s23 = scalar_lea.vmem %s106_s1, 128  ;;  %p179_p11 = scmp.lt.s32.totalorder %s106_s1, %s106_s1 }
  0x21   :  { %v46_v17 = vcvt.s32.f32 %v117_v13  ;;  %v47_v18 = vcvt.s32.f32 %v118_v14  ;;  %v50_v29 = vmin.f32 %v48_v20, 0.0  ;;  %v51_v32 = vmin.f32 %v49_v23, 0.0  ;;  %p175_p10 = scmp.ne.s32.totalorder %s106_s1, %s174_s23  ;;  %p180_p12 = scmp.lt.s32.totalorder %s174_s23, %s174_s23 }
  0x22   :  { %v56_v6 = vmul.f32 1.442695, %v54_v4  ;;  %v58_v7 = vmul.f32 1.442695, %v55_v5 }
  0x23   :  { %v82_v25 = vmul.f32 0.992126, %v46_v17  ;;  %v83_v27 = vmul.f32 0.992126, %v47_v18  ;;  %v80_v40 = vmul.f32 %v46_v17, %v40_v0  ;;  %v81_v42 = vmul.f32 %v47_v18, %v41_v1  ;;  %p181_p13 = por %p180_p12, %p179_p11 }
  0x24   :  { %126 = vpow2.f32 %v56_v6 }
  0x25   :  { %128 = vpow2.f32 %v58_v7  ;;  %v84_v35 = vadd.f32 0.007874016, %v82_v25  ;;  %v85_v37 = vadd.f32 0.007874016, %v83_v27  ;;  %p182_p0 = pnand %p181_p13, %p175_p10 }
  0x31   :  { %v127_v8 = vpop.eup %126 }
  0x32   :  { %v129_v9 = vpop.eup %128  ;;  %v60_v10 = vadd.f32 1.0, %v127_v8  ;;  %v63_v15 = vmul.f32 -0.5, %v127_v8  ;;  %v66_v21 = vand.u32 2147483647, %v127_v8 }
  0x33   :  { %v69_v11 = vadd.f32 1.0, %v129_v9  ;;  %v72_v16 = vmul.f32 -0.5, %v129_v9  ;;  %v75_v24 = vand.u32 2147483647, %v129_v9 }
  0x34   :  { %130 = vlog2.f32 %v60_v10  ;;  %v64_v19 = vadd.f32 1.0, %v63_v15  ;;  %vm67_vm0 = vcmp.lt.f32.partialorder %v66_v21, 0.0004427343 }
  0x35   :  { %132 = vlog2.f32 %v69_v11  ;;  %v73_v22 = vadd.f32 1.0, %v72_v16  ;;  %vm76_vm1 = vcmp.lt.f32.partialorder %v75_v24, 0.0004427343 }
  0x36   :  { %v65_v26 = vmul.f32 %v127_v8, %v64_v19 }
  0x37   :  { %v74_v30 = vmul.f32 %v129_v9, %v73_v22 }
  0x41   :  { %v131_v28 = vpop.eup %130 }
  0x42   :  { %v133_v31 = vpop.eup %132  ;;  %v62_v33 = vmul.f32 0.6931472, %v131_v28 }
  0x43   :  { %v71_v34 = vmul.f32 0.6931472, %v133_v31 }
  0x44   :  { %v68_v36 = vsel %vm67_vm0, %v65_v26, %v62_v33 }
  0x45   :  { %v77_v38 = vsel %vm76_vm1, %v74_v30, %v71_v34  ;;  %v78_v39 = vsub.f32 %v50_v29, %v68_v36 }
  0x46   :  { %v79_v41 = vsub.f32 %v51_v32, %v77_v38 }
  0x47   :  { %v86_v43 = vmul.f32 %v84_v35, %v78_v39 }
  0x48   :  { %v87_v44 = vmul.f32 %v85_v37, %v79_v41 }
  0x49   :  { %v88_v45 = vadd.f32 %v86_v43, %v80_v40 }
  0x4a   :  { %v89_v46 = vadd.f32 %v87_v44, %v81_v42 }
  0x4c   :  { %v90_v47 = vadd.f32 %v89_v46, %v88_v45 }
  0x4e   :  { %v91_v48 = vrot.slane %v90_v47, 4 }
  0x50   :  { %v92_v49 = vadd.f32 %v91_v48, %v90_v47 }
  0x52   :  { %v93_v50 = vrot.slane %v92_v49, 2 }
  0x54   :  { %v94_v51 = vadd.f32 %v93_v50, %v92_v49 }
  0x56   :  { %v95_v52 = vrot.slane %v94_v51, 1 }
  0x58   :  { %v96_v53 = vadd.f32 %v95_v52, %v94_v51 }
  0x5a   :  { %v97_v54 = vsub.f32 0.0, %v96_v53 }
  0x5c   :  { %98 = vst [vmem:[#allocation7] sm:$0xff] %v97_v54 }
  0x5d   :  { %185 = shalt.err (!%p182_p0)
}
  0x5e   :  { %108 = dma.vmem_to_hbm [thread:$0]  %s106_s1, 128, %s233_s2, [#allocation4]  }
  0x5f   :  { %198 = dma.done.wait [#allocation4], 128  }
  0x60   :  { %199 = vsyncadd [#allocation4], 4294967168 }
  0x61   :  { %112 = vsyncpa [#allocation3], 1 }
  0x62   :  { %113 = vsyncpa [#allocation6], 1 }
  0x63   :  { %114 = vsyncpa [#allocation4], 1 }

</bundles_post_ra>
